<compile_context>
chip_gen: v7x
topology: tpu7x:2x2x1
jax: 0.10.0
libtpu: 0.0.40
codegen_flags: <defaults>
</compile_context>

<pallas_src>
import functools

import jax
import jax.numpy as jnp
from jax.experimental import pallas as pl
from jax.experimental.pallas import tpu as pltpu

_LANE = 128
_SUBLANE = 8
# 48 MiB scoped VMEM: above the v5e (16 MiB) / v6e (32 MiB) defaults, below
# v7x's 64 MiB physical VMEM with headroom.  Per-step footprints here are
# far smaller (a few hundred KiB), so this is never the limiter.
_VMEM_LIMIT = 48 * 1024 * 1024


def _round_up(x, m):
    return ((x + m - 1) // m) * m


# ----------------------------------------------------------------------------
# Kernel 1: router  (logits matmul + softmax), tiled over tokens.
#   Output block is (TN, num_experts) -- full-dim last axis, no 128-expert
#   padding, so probs HBM traffic is E/128 of the padded version.
# ----------------------------------------------------------------------------
def _router_kernel(x_ref, wr_ref, br_ref, probs_ref):
    # x: (TN, d_pad) bf16, wr: (d_pad, E) bf16, br: (1, E) f32
    logits = jnp.dot(x_ref[...], wr_ref[...],
                     preferred_element_type=jnp.float32) + br_ref[...]
    m = jnp.max(logits, axis=-1, keepdims=True)
    ex = jnp.exp(logits - m)
    denom = jnp.sum(ex, axis=-1, keepdims=True)
    probs_ref[...] = ex / denom     # exact division: aux-loss stats match f32


def router_forward(x_pad, wr, br, *, tn):
    n_pad, d_pad = x_pad.shape
    num_experts = wr.shape[1]
    return pl.pallas_call(
        _router_kernel,
        out_shape=jax.ShapeDtypeStruct((n_pad, num_experts), jnp.float32),
        grid=(n_pad // tn,),
        in_specs=[
            pl.BlockSpec((tn, d_pad), lambda i: (i, 0)),
            pl.BlockSpec((d_pad, num_experts), lambda i: (0, 0)),
            pl.BlockSpec((1, num_experts), lambda i: (0, 0)),
        ],
        out_specs=pl.BlockSpec((tn, num_experts), lambda i: (i, 0)),
        compiler_params=pltpu.CompilerParams(
            dimension_semantics=("parallel",),
            vmem_limit_bytes=_VMEM_LIMIT),
    )(x_pad, wr, br)


# ----------------------------------------------------------------------------
# Kernel 2: fused dense MoE (the hot path).
#   One pass over token tiles; all expert weights stay VMEM-resident
#   (constant index_map).  Each tile runs every expert's MLP on the MXU and
#   accumulates  combine[n, e] * expert_e(x[n])  in f32 registers, where
#   combine already encodes routing weight / top-k membership / capacity drop
#   (zero => no contribution).  Each output block is written exactly once,
#   lane-dense; no gather, no scatter-add, no (E, C, d) intermediate in HBM.
# ----------------------------------------------------------------------------
def _moe_dense_kernel(x_ref, c_ref, w1_ref, b1_ref, w2_ref, b2_ref, out_ref):
    # x: (TN, d_pad) bf16, c: (TN, E) f32,
    # w1: (E, d_pad, h_pad) bf16, b1: (E, 1, h_pad) f32,
    # w2: (E, h_pad, d_pad) bf16, b2: (E, 1, d_pad) f32.
    x = x_ref[...]
    c = c_ref[...]
    num_experts = w1_ref.shape[0]
    acc = jnp.zeros(out_ref.shape, jnp.float32)
    for e in range(num_experts):                       # static unroll, E small
        h = jnp.dot(x, w1_ref[e], preferred_element_type=jnp.float32)
        h = jnp.maximum(h + b1_ref[e], 0.0)            # ReLU in f32
        y = jnp.dot(h.astype(jnp.bfloat16), w2_ref[e],
                    preferred_element_type=jnp.float32) + b2_ref[e]
        acc = acc + c[:, e:e + 1] * y                  # (TN,1) * (TN,d_pad)
    out_ref[...] = acc


def moe_dense_forward(x_pad, combine_pad, w1, b1, w2, b2, *, tn):
    n_pad, d_pad = x_pad.shape
    num_experts, _, h_pad = w1.shape
    return pl.pallas_call(
        _moe_dense_kernel,
        out_shape=jax.ShapeDtypeStruct((n_pad, d_pad), jnp.float32),
        grid=(n_pad // tn,),
        in_specs=[
            pl.BlockSpec((tn, d_pad), lambda i: (i, 0)),
            pl.BlockSpec((tn, num_experts), lambda i: (i, 0)),
            pl.BlockSpec((num_experts, d_pad, h_pad), lambda i: (0, 0, 0)),
            pl.BlockSpec((num_experts, 1, h_pad), lambda i: (0, 0, 0)),
            pl.BlockSpec((num_experts, h_pad, d_pad), lambda i: (0, 0, 0)),
            pl.BlockSpec((num_experts, 1, d_pad), lambda i: (0, 0, 0)),
        ],
        out_specs=pl.BlockSpec((tn, d_pad), lambda i: (i, 0)),
        compiler_params=pltpu.CompilerParams(
            dimension_semantics=("parallel",),
            vmem_limit_bytes=_VMEM_LIMIT),
    )(x_pad, combine_pad, w1, b1, w2, b2)


# ----------------------------------------------------------------------------
# ExpertParallel forward (JAX glue around the two kernels)
# ----------------------------------------------------------------------------
@functools.partial(jax.jit, static_argnames=("num_experts", "top_k",
                                             "capacity_factor"))
def expert_parallel_forward(x, params, *, num_experts, top_k, capacity_factor):
    orig_shape = x.shape
    batch_size = orig_shape[0]
    d = orig_shape[-1]
    x2d = x.reshape(-1, d)
    n = x2d.shape[0]
    world_size = 1  # single TPU device; dist.all_reduce is a no-op

    # capacity computed from the *leading batch dim*, exactly as the reference
    capacity = int(capacity_factor * batch_size / (top_k * world_size))
    capacity = max(capacity, 1)

    hdim = params["w1"].shape[2]
    d_pad = _round_up(d, _LANE)
    h_pad = _round_up(hdim, _LANE)

    # Token tile: up to 512 (roofline-friendly), clamped for tiny inputs.
    tn = min(512, _round_up(n, _SUBLANE))
    n_pad = _round_up(n, tn)

    # --- lane-dense padded / bf16 operands ---
    x_pad = jnp.zeros((n_pad, d_pad), jnp.bfloat16).at[:n, :d].set(
        x2d.astype(jnp.bfloat16))
    wr_p = jnp.zeros((d_pad, num_experts), jnp.bfloat16).at[:d, :].set(
        params["wr"].astype(jnp.bfloat16))
    br_p = params["br"].astype(jnp.float32).reshape(1, num_experts)

    # --- router (Pallas, tiled over tokens) ---
    probs = router_forward(x_pad, wr_p, br_p, tn=tn)[:n]          # (N, E) f32

    importance = jnp.sum(probs, axis=0)               # probs.sum(0)   (E,)
    density = jnp.mean(probs, axis=0)                 # probs.mean(0)  (E,)

    # --- top-k routing + capacity drop -> per-(token, expert) combine weight ---
    expert_weights, expert_indices = jax.lax.top_k(probs, top_k)     # (N, k)
    onehot = jax.nn.one_hot(expert_indices, num_experts, dtype=jnp.float32)
    mask_ne = jnp.max(onehot, axis=1)                                # (N, E)
    w_ne = jnp.sum(onehot * expert_weights[..., None], axis=1)       # (N, E)

    # token-order rank among tokens routed to each expert -> capacity drop
    rank = jnp.cumsum(mask_ne, axis=0) - 1.0
    keep = (mask_ne > 0.0) & (rank < capacity)                       # (N, E)
    combine = jnp.where(keep, w_ne, 0.0).astype(jnp.float32)         # (N, E)
    combine_pad = jnp.zeros((n_pad, num_experts), jnp.float32).at[:n].set(
        combine)

    # --- padded bf16 expert weights, f32 biases (stacked over experts) ---
    w1p = jnp.zeros((num_experts, d_pad, h_pad), jnp.bfloat16).at[
        :, :d, :hdim].set(params["w1"].astype(jnp.bfloat16))
    b1p = jnp.zeros((num_experts, 1, h_pad), jnp.float32).at[
        :, :, :hdim].set(params["b1"].astype(jnp.float32))
    w2p = jnp.zeros((num_experts, h_pad, d_pad), jnp.bfloat16).at[
        :, :hdim, :d].set(params["w2"].astype(jnp.bfloat16))
    b2p = jnp.zeros((num_experts, 1, d_pad), jnp.float32).at[
        :, :, :d].set(params["b2"].astype(jnp.float32))

    # --- fused dense MoE (Pallas): weighted expert sum, written once ---
    out_pad = moe_dense_forward(x_pad, combine_pad, w1p, b1p, w2p, b2p, tn=tn)
    final_output = out_pad[:n, :d].reshape(orig_shape)

    # --- auxiliary losses (E-sized reductions, plain JAX) ---
    expert_counts = jnp.sum(mask_ne, axis=0)                          # (E,)
    usage = expert_counts / (batch_size * world_size)
    balance_loss = jnp.sum(density * usage) * num_experts
    importance_loss = jnp.mean(importance ** 2)
    aux_loss = balance_loss + importance_loss

    return final_output, aux_loss


# ----------------------------------------------------------------------------
# Deterministic parameter init (synthetic; shapes from the module __init__)
# ----------------------------------------------------------------------------
def init_params(key, input_dim, hidden_dim, output_dim, num_experts):
    ks = jax.random.split(key, 6)
    s_in = 1.0 / jnp.sqrt(input_dim)
    s_h = 1.0 / jnp.sqrt(hidden_dim)
    return {
        "wr": jax.random.uniform(ks[0], (input_dim, num_experts), jnp.float32,
                                 -s_in, s_in),
        "br": jax.random.uniform(ks[1], (1, num_experts), jnp.float32,
                                 -s_in, s_in),
        "w1": jax.random.uniform(ks[2], (num_experts, input_dim, hidden_dim),
                                 jnp.float32, -s_in, s_in),
        "b1": jax.random.uniform(ks[3], (num_experts, 1, hidden_dim),
                                 jnp.float32, -s_in, s_in),
        "w2": jax.random.uniform(ks[4], (num_experts, hidden_dim, output_dim),
                                 jnp.float32, -s_h, s_h),
        "b2": jax.random.uniform(ks[5], (num_experts, 1, output_dim),
                                 jnp.float32, -s_h, s_h),
    }


if __name__ == "__main__":
    input_dim = 32
    output_dim = 32      # must equal input_dim (PyTorch scatters into zeros_like(x))
    hidden_dim = 64
    num_experts = 4
    top_k = 2
    capacity_factor = 1.0

    key = jax.random.PRNGKey(0)
    pkey, xkey = jax.random.split(key)
    params = init_params(pkey, input_dim, hidden_dim, output_dim, num_experts)

    # x: (batch=8, seq=4, input_dim=32) -> N = 32 tokens, capacity = 4
    x = jax.random.normal(xkey, (8, 4, input_dim), jnp.float32)

    out, aux = expert_parallel_forward(
        x, params, num_experts=num_experts, top_k=top_k,
        capacity_factor=capacity_factor)
    jax.block_until_ready((out, aux))

    assert out.shape == x.shape and out.dtype == jnp.float32
    assert aux.shape == () and jnp.isfinite(aux)
    assert bool(jnp.all(jnp.isfinite(out)))
    print("KERNEL_OK")
</pallas_src>

<mosaic_0001>
module attributes {stable_mosaic.version = 11 : i64} {
  func.func @_router_kernel(%arg0: i32, %arg1: memref<32x128xbf16, #tpu.memory_space<vmem>>, %arg2: memref<128x4xbf16, #tpu.memory_space<vmem>>, %arg3: memref<1x4xf32, #tpu.memory_space<vmem>>, %arg4: memref<32x4xf32, #tpu.memory_space<vmem>>) attributes {dimension_semantics = [#tpu.dimension_semantics<parallel>], iteration_bounds = array<i64: 1>, scalar_prefetch = 0 : i64, scratch_operands = 0 : i64, tpu.core_type = #tpu.core_type<tc>, window_params = [{transform_indices = @transform_0, window_bounds = array<i64: 32, 128>}, {pipeline_mode = #tpu.pipeline_mode<synchronous>, transform_indices = @transform_1, window_bounds = array<i64: 128, 4>}, {pipeline_mode = #tpu.pipeline_mode<synchronous>, transform_indices = @transform_2, window_bounds = array<i64: 1, 4>}, {transform_indices = @transform_3, window_bounds = array<i64: 32, 4>}]} {
    %c0 = arith.constant 0 : index
    %c0_0 = arith.constant 0 : index
    %0 = vector.load %arg1[%c0, %c0_0] : memref<32x128xbf16, #tpu.memory_space<vmem>>, vector<32x128xbf16>
    %c0_1 = arith.constant 0 : index
    %c0_2 = arith.constant 0 : index
    %1 = vector.load %arg2[%c0_1, %c0_2] : memref<128x4xbf16, #tpu.memory_space<vmem>>, vector<128x4xbf16>
    %cst = arith.constant dense<0.000000e+00> : vector<32x4xf32>
    %2 = tpu.matmul %0, %1, %cst {dimension_numbers = #tpu.dot_dimension_numbers<[1], [0], [0], [1], [0, 0, 1, 1], [], []>} : vector<32x128xbf16>, vector<128x4xbf16>, vector<32x4xf32> -> vector<32x4xf32>
    %c0_3 = arith.constant 0 : index
    %c0_4 = arith.constant 0 : index
    %3 = vector.load %arg3[%c0_3, %c0_4] : memref<1x4xf32, #tpu.memory_space<vmem>>, vector<1x4xf32>
    %4 = vector.broadcast %3 : vector<1x4xf32> to vector<32x4xf32>
    %5 = arith.addf %2, %4 : vector<32x4xf32>
    %cst_5 = arith.constant dense<0xFF800000> : vector<32xf32>
    %6 = vector.multi_reduction <maximumf>, %5, %cst_5 [1] : vector<32x4xf32> to vector<32xf32>
    %7 = vector.shape_cast %6 : vector<32xf32> to vector<32x1xf32>
    %8 = vector.broadcast %7 : vector<32x1xf32> to vector<32x4xf32>
    %9 = arith.subf %5, %8 : vector<32x4xf32>
    %10 = math.exp %9 : vector<32x4xf32>
    %cst_6 = arith.constant dense<0.000000e+00> : vector<32xf32>
    %11 = vector.multi_reduction <add>, %10, %cst_6 [1] : vector<32x4xf32> to vector<32xf32>
    %12 = vector.shape_cast %11 : vector<32xf32> to vector<32x1xf32>
    %13 = vector.broadcast %12 : vector<32x1xf32> to vector<32x4xf32>
    %14 = arith.divf %10, %13 : vector<32x4xf32>
    %c0_7 = arith.constant 0 : index
    %c0_8 = arith.constant 0 : index
    %15 = vector.load %arg4[%c0_7, %c0_8] : memref<32x4xf32, #tpu.memory_space<vmem>>, vector<32x4xf32>
    tpu.vector_store %arg4[%c0_7, %c0_8], %14 {strides = array<i32>} : memref<32x4xf32, #tpu.memory_space<vmem>>, vector<32x4xf32>,
    return
  }
  func.func @transform_0(%arg0: i32) -> (i32, i32) {
    %c0_i32 = arith.constant 0 : i32
    %c0_i32_0 = arith.constant 0 : i32
    return %arg0, %c0_i32 : i32, i32
  }
  func.func @transform_1(%arg0: i32) -> (i32, i32) {
    %c0_i32 = arith.constant 0 : i32
    %c0_i32_0 = arith.constant 0 : i32
    %c0_i32_1 = arith.constant 0 : i32
    return %c0_i32, %c0_i32_0 : i32, i32
  }
  func.func @transform_2(%arg0: i32) -> (i32, i32) {
    %c0_i32 = arith.constant 0 : i32
    %c0_i32_0 = arith.constant 0 : i32
    %c0_i32_1 = arith.constant 0 : i32
    return %c0_i32, %c0_i32_0 : i32, i32
  }
  func.func @transform_3(%arg0: i32) -> (i32, i32) {
    %c0_i32 = arith.constant 0 : i32
    %c0_i32_0 = arith.constant 0 : i32
    return %arg0, %c0_i32 : i32, i32
  }
}

module attributes {stable_mosaic.version = 11 : i64} {
  func.func @_moe_dense_kernel(%arg0: i32, %arg1: memref<32x128xbf16, #tpu.memory_space<vmem>>, %arg2: memref<32x4xf32, #tpu.memory_space<vmem>>, %arg3: memref<4x128x128xbf16, #tpu.memory_space<vmem>>, %arg4: memref<4x1x128xf32, #tpu.memory_space<vmem>>, %arg5: memref<4x128x128xbf16, #tpu.memory_space<vmem>>, %arg6: memref<4x1x128xf32, #tpu.memory_space<vmem>>, %arg7: memref<32x128xf32, #tpu.memory_space<vmem>>) attributes {dimension_semantics = [#tpu.dimension_semantics<parallel>], iteration_bounds = array<i64: 1>, scalar_prefetch = 0 : i64, scratch_operands = 0 : i64, tpu.core_type = #tpu.core_type<tc>, window_params = [{transform_indices = @transform_0, window_bounds = array<i64: 32, 128>}, {transform_indices = @transform_1, window_bounds = array<i64: 32, 4>}, {pipeline_mode = #tpu.pipeline_mode<synchronous>, transform_indices = @transform_2, window_bounds = array<i64: 4, 128, 128>}, {pipeline_mode = #tpu.pipeline_mode<synchronous>, transform_indices = @transform_3, window_bounds = array<i64: 4, 1, 128>}, {pipeline_mode = #tpu.pipeline_mode<synchronous>, transform_indices = @transform_4, window_bounds = array<i64: 4, 128, 128>}, {pipeline_mode = #tpu.pipeline_mode<synchronous>, transform_indices = @transform_5, window_bounds = array<i64: 4, 1, 128>}, {transform_indices = @transform_6, window_bounds = array<i64: 32, 128>}]} {
    %c0 = arith.constant 0 : index
    %c0_0 = arith.constant 0 : index
    %0 = vector.load %arg1[%c0, %c0_0] : memref<32x128xbf16, #tpu.memory_space<vmem>>, vector<32x128xbf16>
    %c0_1 = arith.constant 0 : index
    %c0_2 = arith.constant 0 : index
    %1 = vector.load %arg2[%c0_1, %c0_2] : memref<32x4xf32, #tpu.memory_space<vmem>>, vector<32x4xf32>
    %cst = arith.constant 0.000000e+00 : f32
    %2 = vector.broadcast %cst : f32 to vector<32x128xf32>
    %c0_3 = arith.constant 0 : index
    %c0_4 = arith.constant 0 : index
    %c0_5 = arith.constant 0 : index
    %3 = vector.load %arg3[%c0_3, %c0_4, %c0_5] : memref<4x128x128xbf16, #tpu.memory_space<vmem>>, vector<1x128x128xbf16>
    %4 = vector.shape_cast %3 : vector<1x128x128xbf16> to vector<128x128xbf16>
    %cst_6 = arith.constant dense<0.000000e+00> : vector<32x128xf32>
    %5 = tpu.matmul %0, %4, %cst_6 {dimension_numbers = #tpu.dot_dimension_numbers<[1], [0], [0], [1], [0, 0, 1, 1], [], []>} : vector<32x128xbf16>, vector<128x128xbf16>, vector<32x128xf32> -> vector<32x128xf32>
    %c0_7 = arith.constant 0 : index
    %c0_8 = arith.constant 0 : index
    %c0_9 = arith.constant 0 : index
    %6 = vector.load %arg4[%c0_7, %c0_8, %c0_9] : memref<4x1x128xf32, #tpu.memory_space<vmem>>, vector<1x1x128xf32>
    %7 = vector.shape_cast %6 : vector<1x1x128xf32> to vector<1x128xf32>
    %8 = vector.broadcast %7 : vector<1x128xf32> to vector<32x128xf32>
    %9 = arith.addf %5, %8 : vector<32x128xf32>
    %cst_10 = arith.constant 0.000000e+00 : f32
    %10 = vector.broadcast %cst_10 : f32 to vector<32x128xf32>
    %11 = arith.maximumf %9, %10 : vector<32x128xf32>
    %12 = arith.truncf %11 : vector<32x128xf32> to vector<32x128xbf16>
    %c0_11 = arith.constant 0 : index
    %c0_12 = arith.constant 0 : index
    %c0_13 = arith.constant 0 : index
    %13 = vector.load %arg5[%c0_11, %c0_12, %c0_13] : memref<4x128x128xbf16, #tpu.memory_space<vmem>>, vector<1x128x128xbf16>
    %14 = vector.shape_cast %13 : vector<1x128x128xbf16> to vector<128x128xbf16>
    %cst_14 = arith.constant dense<0.000000e+00> : vector<32x128xf32>
    %15 = tpu.matmul %12, %14, %cst_14 {dimension_numbers = #tpu.dot_dimension_numbers<[1], [0], [0], [1], [0, 0, 1, 1], [], []>} : vector<32x128xbf16>, vector<128x128xbf16>, vector<32x128xf32> -> vector<32x128xf32>
    %c0_15 = arith.constant 0 : index
    %c0_16 = arith.constant 0 : index
    %c0_17 = arith.constant 0 : index
    %16 = vector.load %arg6[%c0_15, %c0_16, %c0_17] : memref<4x1x128xf32, #tpu.memory_space<vmem>>, vector<1x1x128xf32>
    %17 = vector.shape_cast %16 : vector<1x1x128xf32> to vector<1x128xf32>
    %18 = vector.broadcast %17 : vector<1x128xf32> to vector<32x128xf32>
    %19 = arith.addf %15, %18 : vector<32x128xf32>
    %20 = vector.extract_strided_slice %1 {offsets = [0, 0], sizes = [32, 1], strides = [1, 1]} : vector<32x4xf32> to vector<32x1xf32>
    %21 = vector.broadcast %20 : vector<32x1xf32> to vector<32x128xf32>
    %22 = arith.mulf %21, %19 : vector<32x128xf32>
    %23 = arith.addf %2, %22 : vector<32x128xf32>
    %c1 = arith.constant 1 : index
    %c0_18 = arith.constant 0 : index
    %c0_19 = arith.constant 0 : index
    %24 = vector.load %arg3[%c1, %c0_18, %c0_19] : memref<4x128x128xbf16, #tpu.memory_space<vmem>>, vector<1x128x128xbf16>
    %25 = vector.shape_cast %24 : vector<1x128x128xbf16> to vector<128x128xbf16>
    %cst_20 = arith.constant dense<0.000000e+00> : vector<32x128xf32>
    %26 = tpu.matmul %0, %25, %cst_20 {dimension_numbers = #tpu.dot_dimension_numbers<[1], [0], [0], [1], [0, 0, 1, 1], [], []>} : vector<32x128xbf16>, vector<128x128xbf16>, vector<32x128xf32> -> vector<32x128xf32>
    %c1_21 = arith.constant 1 : index
    %c0_22 = arith.constant 0 : index
    %c0_23 = arith.constant 0 : index
    %27 = vector.load %arg4[%c1_21, %c0_22, %c0_23] : memref<4x1x128xf32, #tpu.memory_space<vmem>>, vector<1x1x128xf32>
    %28 = vector.shape_cast %27 : vector<1x1x128xf32> to vector<1x128xf32>
    %29 = vector.broadcast %28 : vector<1x128xf32> to vector<32x128xf32>
    %30 = arith.addf %26, %29 : vector<32x128xf32>
    %cst_24 = arith.constant 0.000000e+00 : f32
    %31 = vector.broadcast %cst_24 : f32 to vector<32x128xf32>
    %32 = arith.maximumf %30, %31 : vector<32x128xf32>
    %33 = arith.truncf %32 : vector<32x128xf32> to vector<32x128xbf16>
    %c1_25 = arith.constant 1 : index
    %c0_26 = arith.constant 0 : index
    %c0_27 = arith.constant 0 : index
    %34 = vector.load %arg5[%c1_25, %c0_26, %c0_27] : memref<4x128x128xbf16, #tpu.memory_space<vmem>>, vector<1x128x128xbf16>
    %35 = vector.shape_cast %34 : vector<1x128x128xbf16> to vector<128x128xbf16>
    %cst_28 = arith.constant dense<0.000000e+00> : vector<32x128xf32>
    %36 = tpu.matmul %33, %35, %cst_28 {dimension_numbers = #tpu.dot_dimension_numbers<[1], [0], [0], [1], [0, 0, 1, 1], [], []>} : vector<32x128xbf16>, vector<128x128xbf16>, vector<32x128xf32> -> vector<32x128xf32>
    %c1_29 = arith.constant 1 : index
    %c0_30 = arith.constant 0 : index
    %c0_31 = arith.constant 0 : index
    %37 = vector.load %arg6[%c1_29, %c0_30, %c0_31] : memref<4x1x128xf32, #tpu.memory_space<vmem>>, vector<1x1x128xf32>
    %38 = vector.shape_cast %37 : vector<1x1x128xf32> to vector<1x128xf32>
    %39 = vector.broadcast %38 : vector<1x128xf32> to vector<32x128xf32>
    %40 = arith.addf %36, %39 : vector<32x128xf32>
    %41 = vector.extract_strided_slice %1 {offsets = [0, 1], sizes = [32, 1], strides = [1, 1]} : vector<32x4xf32> to vector<32x1xf32>
    %42 = vector.broadcast %41 : vector<32x1xf32> to vector<32x128xf32>
    %43 = arith.mulf %42, %40 : vector<32x128xf32>
    %44 = arith.addf %23, %43 : vector<32x128xf32>
    %c2 = arith.constant 2 : index
    %c0_32 = arith.constant 0 : index
    %c0_33 = arith.constant 0 : index
    %45 = vector.load %arg3[%c2, %c0_32, %c0_33] : memref<4x128x128xbf16, #tpu.memory_space<vmem>>, vector<1x128x128xbf16>
    %46 = vector.shape_cast %45 : vector<1x128x128xbf16> to vector<128x128xbf16>
    %cst_34 = arith.constant dense<0.000000e+00> : vector<32x128xf32>
    %47 = tpu.matmul %0, %46, %cst_34 {dimension_numbers = #tpu.dot_dimension_numbers<[1], [0], [0], [1], [0, 0, 1, 1], [], []>} : vector<32x128xbf16>, vector<128x128xbf16>, vector<32x128xf32> -> vector<32x128xf32>
    %c2_35 = arith.constant 2 : index
    %c0_36 = arith.constant 0 : index
    %c0_37 = arith.constant 0 : index
    %48 = vector.load %arg4[%c2_35, %c0_36, %c0_37] : memref<4x1x128xf32, #tpu.memory_space<vmem>>, vector<1x1x128xf32>
    %49 = vector.shape_cast %48 : vector<1x1x128xf32> to vector<1x128xf32>
    %50 = vector.broadcast %49 : vector<1x128xf32> to vector<32x128xf32>
    %51 = arith.addf %47, %50 : vector<32x128xf32>
    %cst_38 = arith.constant 0.000000e+00 : f32
    %52 = vector.broadcast %cst_38 : f32 to vector<32x128xf32>
    %53 = arith.maximumf %51, %52 : vector<32x128xf32>
    %54 = arith.truncf %53 : vector<32x128xf32> to vector<32x128xbf16>
    %c2_39 = arith.constant 2 : index
    %c0_40 = arith.constant 0 : index
    %c0_41 = arith.constant 0 : index
    %55 = vector.load %arg5[%c2_39, %c0_40, %c0_41] : memref<4x128x128xbf16, #tpu.memory_space<vmem>>, vector<1x128x128xbf16>
    %56 = vector.shape_cast %55 : vector<1x128x128xbf16> to vector<128x128xbf16>
    %cst_42 = arith.constant dense<0.000000e+00> : vector<32x128xf32>
    %57 = tpu.matmul %54, %56, %cst_42 {dimension_numbers = #tpu.dot_dimension_numbers<[1], [0], [0], [1], [0, 0, 1, 1], [], []>} : vector<32x128xbf16>, vector<128x128xbf16>, vector<32x128xf32> -> vector<32x128xf32>
    %c2_43 = arith.constant 2 : index
    %c0_44 = arith.constant 0 : index
    %c0_45 = arith.constant 0 : index
    %58 = vector.load %arg6[%c2_43, %c0_44, %c0_45] : memref<4x1x128xf32, #tpu.memory_space<vmem>>, vector<1x1x128xf32>
    %59 = vector.shape_cast %58 : vector<1x1x128xf32> to vector<1x128xf32>
    %60 = vector.broadcast %59 : vector<1x128xf32> to vector<32x128xf32>
    %61 = arith.addf %57, %60 : vector<32x128xf32>
    %62 = vector.extract_strided_slice %1 {offsets = [0, 2], sizes = [32, 1], strides = [1, 1]} : vector<32x4xf32> to vector<32x1xf32>
    %63 = vector.broadcast %62 : vector<32x1xf32> to vector<32x128xf32>
    %64 = arith.mulf %63, %61 : vector<32x128xf32>
    %65 = arith.addf %44, %64 : vector<32x128xf32>
    %c3 = arith.constant 3 : index
    %c0_46 = arith.constant 0 : index
    %c0_47 = arith.constant 0 : index
    %66 = vector.load %arg3[%c3, %c0_46, %c0_47] : memref<4x128x128xbf16, #tpu.memory_space<vmem>>, vector<1x128x128xbf16>
    %67 = vector.shape_cast %66 : vector<1x128x128xbf16> to vector<128x128xbf16>
    %cst_48 = arith.constant dense<0.000000e+00> : vector<32x128xf32>
    %68 = tpu.matmul %0, %67, %cst_48 {dimension_numbers = #tpu.dot_dimension_numbers<[1], [0], [0], [1], [0, 0, 1, 1], [], []>} : vector<32x128xbf16>, vector<128x128xbf16>, vector<32x128xf32> -> vector<32x128xf32>
    %c3_49 = arith.constant 3 : index
    %c0_50 = arith.constant 0 : index
    %c0_51 = arith.constant 0 : index
    %69 = vector.load %arg4[%c3_49, %c0_50, %c0_51] : memref<4x1x128xf32, #tpu.memory_space<vmem>>, vector<1x1x128xf32>
    %70 = vector.shape_cast %69 : vector<1x1x128xf32> to vector<1x128xf32>
    %71 = vector.broadcast %70 : vector<1x128xf32> to vector<32x128xf32>
    %72 = arith.addf %68, %71 : vector<32x128xf32>
    %cst_52 = arith.constant 0.000000e+00 : f32
    %73 = vector.broadcast %cst_52 : f32 to vector<32x128xf32>
    %74 = arith.maximumf %72, %73 : vector<32x128xf32>
    %75 = arith.truncf %74 : vector<32x128xf32> to vector<32x128xbf16>
    %c3_53 = arith.constant 3 : index
    %c0_54 = arith.constant 0 : index
    %c0_55 = arith.constant 0 : index
    %76 = vector.load %arg5[%c3_53, %c0_54, %c0_55] : memref<4x128x128xbf16, #tpu.memory_space<vmem>>, vector<1x128x128xbf16>
    %77 = vector.shape_cast %76 : vector<1x128x128xbf16> to vector<128x128xbf16>
    %cst_56 = arith.constant dense<0.000000e+00> : vector<32x128xf32>
    %78 = tpu.matmul %75, %77, %cst_56 {dimension_numbers = #tpu.dot_dimension_numbers<[1], [0], [0], [1], [0, 0, 1, 1], [], []>} : vector<32x128xbf16>, vector<128x128xbf16>, vector<32x128xf32> -> vector<32x128xf32>
    %c3_57 = arith.constant 3 : index
    %c0_58 = arith.constant 0 : index
    %c0_59 = arith.constant 0 : index
    %79 = vector.load %arg6[%c3_57, %c0_58, %c0_59] : memref<4x1x128xf32, #tpu.memory_space<vmem>>, vector<1x1x128xf32>
    %80 = vector.shape_cast %79 : vector<1x1x128xf32> to vector<1x128xf32>
    %81 = vector.broadcast %80 : vector<1x128xf32> to vector<32x128xf32>
    %82 = arith.addf %78, %81 : vector<32x128xf32>
    %83 = vector.extract_strided_slice %1 {offsets = [0, 3], sizes = [32, 1], strides = [1, 1]} : vector<32x4xf32> to vector<32x1xf32>
    %84 = vector.broadcast %83 : vector<32x1xf32> to vector<32x128xf32>
    %85 = arith.mulf %84, %82 : vector<32x128xf32>
    %86 = arith.addf %65, %85 : vector<32x128xf32>
    %c0_60 = arith.constant 0 : index
    %c0_61 = arith.constant 0 : index
    %87 = vector.load %arg7[%c0_60, %c0_61] : memref<32x128xf32, #tpu.memory_space<vmem>>, vector<32x128xf32>
    tpu.vector_store %arg7[%c0_60, %c0_61], %86 {strides = array<i32>} : memref<32x128xf32, #tpu.memory_space<vmem>>, vector<32x128xf32>,
    return
  }
  func.func @transform_0(%arg0: i32) -> (i32, i32) {
    %c0_i32 = arith.constant 0 : i32
    %c0_i32_0 = arith.constant 0 : i32
    return %arg0, %c0_i32 : i32, i32
  }
  func.func @transform_1(%arg0: i32) -> (i32, i32) {
    %c0_i32 = arith.constant 0 : i32
    %c0_i32_0 = arith.constant 0 : i32
    return %arg0, %c0_i32 : i32, i32
  }
  func.func @transform_2(%arg0: i32) -> (i32, i32, i32) {
    %c0_i32 = arith.constant 0 : i32
    %c0_i32_0 = arith.constant 0 : i32
    %c0_i32_1 = arith.constant 0 : i32
    %c0_i32_2 = arith.constant 0 : i32
    return %c0_i32, %c0_i32_0, %c0_i32_1 : i32, i32, i32
  }
  func.func @transform_3(%arg0: i32) -> (i32, i32, i32) {
    %c0_i32 = arith.constant 0 : i32
    %c0_i32_0 = arith.constant 0 : i32
    %c0_i32_1 = arith.constant 0 : i32
    %c0_i32_2 = arith.constant 0 : i32
    return %c0_i32, %c0_i32_0, %c0_i32_1 : i32, i32, i32
  }
  func.func @transform_4(%arg0: i32) -> (i32, i32, i32) {
    %c0_i32 = arith.constant 0 : i32
    %c0_i32_0 = arith.constant 0 : i32
    %c0_i32_1 = arith.constant 0 : i32
    %c0_i32_2 = arith.constant 0 : i32
    return %c0_i32, %c0_i32_0, %c0_i32_1 : i32, i32, i32
  }
  func.func @transform_5(%arg0: i32) -> (i32, i32, i32) {
    %c0_i32 = arith.constant 0 : i32
    %c0_i32_0 = arith.constant 0 : i32
    %c0_i32_1 = arith.constant 0 : i32
    %c0_i32_2 = arith.constant 0 : i32
    return %c0_i32, %c0_i32_0, %c0_i32_1 : i32, i32, i32
  }
  func.func @transform_6(%arg0: i32) -> (i32, i32) {
    %c0_i32 = arith.constant 0 : i32
    %c0_i32_0 = arith.constant 0 : i32
    return %arg0, %c0_i32 : i32, i32
  }
}

</mosaic_0001>

<bundles_post_ra>
// kernel: expert_parallel_forward.2
= control target key start
LH: loop header
LB: loop body
LE: loop exit
PB: predicated region body
PF: predicated region fallthrough
CT: control target
= control target key end

     0   :  { %vm151_vm0 = vcmask 31744   ;;  %s348_s1 = inlined_call_operand.vmem [shape: bf16[128,4], index: 1, kind: input, shape index: {}]   ;;  %s349_s0 = inlined_call_operand.vmem [shape: bf16[32,128], index: 0, kind: input, shape index: {}]   ;;  %s350_s2 = inlined_call_operand.vmem [shape: f32[1,4], index: 2, kind: input, shape index: {}]   ;;  %s351_s3 = inlined_call_operand.vmem [shape: f32[32,4], index: 3, kind: output, shape index: {}]  }
   0x1   :  { %v245_v0 = vld [vmem:[%s348_s1] sm:$0xff]   ;;  %v246_v1 = vld [vmem:[%s348_s1 + $0x8] sm:$0xff]   ;;  %v247_v2 = vld [vmem:[%s348_s1 + $0x10] sm:$0xff]  }
   0x2   :  { %225 = vmatprep.subr.bf16.mxu0 %v245_v0  ;;  %v248_v3 = vld [vmem:[%s348_s1 + $0x18] sm:$0xff]   ;;  %v253_v4 = vld [vmem:[%s349_s0] sm:$0xff]   ;;  %v250_v6 = vld [vmem:[%s348_s1 + $0x28] sm:$0xff]  }
   0x3   :  { %226 = vmatpush3.bf16.msra.mxu0 %v245_v0  ;;  %241 = vmatprep.mubr.bf16.mxu0 %v253_v4  ;;  %v249_v5 = vld [vmem:[%s348_s1 + $0x20] sm:$0xff]   ;;  %v251_v7 = vld [vmem:[%s348_s1 + $0x30] sm:$0xff]   ;;  %v252_v8 = vld [vmem:[%s348_s1 + $0x38] sm:$0xff]  }
   0x4   :  { %227 = vmatprep.subr.bf16.mxu0 %v246_v1  ;;  %v254_v9 = vld [vmem:[%s349_s0 + $0x8] sm:$0xff]   ;;  %v204_v10 = vld [vmem:[%s350_s2] ss:$0 sm:$0xff] }
   0x7   :  { %228 = vmatpush3.bf16.msra.mxu0 %v246_v1 }
   0x8   :  { %229 = vmatprep.subr.bf16.mxu0 %v247_v2 }
   0xb   :  { %230 = vmatpush3.bf16.msra.mxu0 %v247_v2 }
   0xc   :  { %231 = vmatprep.subr.bf16.mxu0 %v248_v3 }
   0xf   :  { %232 = vmatpush3.bf16.msra.mxu0 %v248_v3 }
  0x10   :  { %233 = vmatprep.subr.bf16.mxu0 %v249_v5 }
  0x13   :  { %234 = vmatpush3.bf16.msra.mxu0 %v249_v5 }
  0x14   :  { %235 = vmatprep.subr.bf16.mxu0 %v250_v6 }
  0x17   :  { %236 = vmatpush3.bf16.msra.mxu0 %v250_v6 }
  0x18   :  { %237 = vmatprep.subr.bf16.mxu0 %v251_v7 }
  0x1b   :  { %238 = vmatpush3.bf16.msra.mxu0 %v251_v7 }
  0x1c   :  { %239 = vmatprep.subr.bf16.mxu0 %v252_v8 }
  0x1f   :  { %240 = vmatpush3.bf16.msra.mxu0 %v252_v8 }
  0x22   :  { %242 = vmatmul.mubr.bf16.vlgmr.msra.gmra.mrb[0].mxu0 %v254_v9 }
  0xf5   :  { %v243_v11 = vpop.f32.mrb[0].mxu0 }
  0xf6   :  { %v145_v12 = vadd.f32 %v243_v11, %v204_v10  ;;  %v136_v13 = vpop.f32.mrb[1].mxu0 }
  0xf7   :  { %v137_v14 = vadd.f32 %v204_v10, %v136_v13  ;;  %v244_v15 = vpop.f32.mrb[2].mxu0 }
  0xf8   :  { %v148_v16 = vadd.f32 %v244_v15, %v204_v10  ;;  %v139_v17 = vpop.f32.mrb[3].mxu0  ;;  %v158_v18 = vsel %vm151_vm0, %v145_v12, -inf }
  0xf9   :  { %v140_v19 = vadd.f32 %v204_v10, %v139_v17  ;;  %159 = vmax.xlane.f32.xlu1 %v158_v18  ;;  %v152_v20 = vsel %vm151_vm0, %v137_v14, -inf }
  0xfa   :  { %153 = vmax.xlane.f32.xlu0 %v152_v20  ;;  %v161_v21 = vsel %vm151_vm0, %v148_v16, -inf }
  0xfb   :  { %v155_v22 = vsel %vm151_vm0, %v140_v19, -inf }
  0xfd   :  { %162 = vmax.xlane.f32.xlu1 %v161_v21 }
  0xfe   :  { %156 = vmax.xlane.f32.xlu0 %v155_v22 }
 0x186   :  { %v160_v23 = vpop.xlane.xlu1 %159 }
 0x187   :  { %v166_v24 = vsub.f32 %v145_v12, %v160_v23  ;;  %v154_v25 = vpop.xlane.xlu0 %153 }
 0x188   :  { %v164_v26 = vsub.f32 %v137_v14, %v154_v25 }
 0x189   :  { %v172_v27 = vmul.f32 1.442695, %v166_v24 }
 0x18a   :  { %v168_v28 = vmul.f32 1.442695, %v164_v26  ;;  %v163_v29 = vpop.xlane.xlu1 %162 }
 0x18b   :  { %v167_v30 = vsub.f32 %v148_v16, %v163_v29  ;;  %v157_v31 = vpop.xlane.xlu0 %156 }
 0x18c   :  { %255 = vpow2.f32 %v168_v28  ;;  %v165_v32 = vsub.f32 %v140_v19, %v157_v31 }
 0x18d   :  { %257 = vpow2.f32 %v172_v27  ;;  %v174_v33 = vmul.f32 1.442695, %v167_v30 }
 0x18e   :  { %v170_v34 = vmul.f32 1.442695, %v165_v32 }
 0x190   :  { %259 = vpow2.f32 %v170_v34 }
 0x191   :  { %261 = vpow2.f32 %v174_v33 }
 0x196   :  { %v256_v35 = vpop.eup %255 }
 0x197   :  { %v176_v36 = vsel %vm151_vm0, %v256_v35, 0.0  ;;  %v258_v37 = vpop.eup %257 }
 0x198   :  { %177 = vadd.xlane.f32.xlu0 %v176_v36  ;;  %v182_v39 = vsel %vm151_vm0, %v258_v37, 0.0 }
 0x19a   :  { %v260_v38 = vpop.eup %259 }
 0x19b   :  { %v179_v40 = vsel %vm151_vm0, %v260_v38, 0.0  ;;  %v262_v41 = vpop.eup %261 }
 0x19c   :  { %183 = vadd.xlane.f32.xlu0 %v182_v39  ;;  %180 = vadd.xlane.f32.xlu1 %v179_v40  ;;  %v185_v42 = vsel %vm151_vm0, %v262_v41, 0.0 }
 0x1a0   :  { %186 = vadd.xlane.f32.xlu1 %v185_v42 }
 0x225   :  { %v178_v43 = vpop.xlane.xlu0 %177 }
 0x226   :  { %263 = vrcp.f32 %v178_v43 }
 0x229   :  { %v181_v44 = vpop.xlane.xlu1 %180  ;;  %v184_v45 = vpop.xlane.xlu0 %183 }
 0x22a   :  { %265 = vrcp.f32 %v181_v44 }
 0x22b   :  { %267 = vrcp.f32 %v184_v45 }
 0x22d   :  { %v187_v46 = vpop.xlane.xlu1 %186 }
 0x22e   :  { %269 = vrcp.f32 %v187_v46 }
 0x230   :  { %v264_v47 = vpop.eup %263 }
 0x231   :  { %v189_v48 = vmul.f32 %v264_v47, %v256_v35 }
 0x233   :  { %196 = vst.msk [vmem:[%s351_s3] sm:$0xff] %vm151_vm0, %v189_v48 }
 0x234   :  { %v266_v49 = vpop.eup %265 }
 0x235   :  { %v268_v50 = vpop.eup %267  ;;  %v191_v51 = vmul.f32 %v266_v49, %v260_v38 }
 0x236   :  { %v193_v52 = vmul.f32 %v268_v50, %v258_v37 }
 0x237   :  { %197 = vst.msk [vmem:[%s351_s3 + $0x8] sm:$0xff] %vm151_vm0, %v191_v51 }
 0x238   :  { %v270_v53 = vpop.eup %269  ;;  %198 = vst.msk [vmem:[%s351_s3 + $0x10] sm:$0xff] %vm151_vm0, %v193_v52 }
 0x239   :  { %v195_v54 = vmul.f32 %v270_v53, %v262_v41 }
 0x23b   :  { %199 = vst.msk [vmem:[%s351_s3 + $0x18] sm:$0xff] %vm151_vm0, %v195_v54 }

// kernel: expert_parallel_forward.3
= control target key start
LH: loop header
LB: loop body
LE: loop exit
PB: predicated region body
PF: predicated region fallthrough
CT: control target
= control target key end

     0   :  { %s1982_s0 = inlined_call_operand.vmem [shape: bf16[32,128], index: 0, kind: input, shape index: {}]   ;;  %s1983_s1 = inlined_call_operand.vmem [shape: f32[32,4], index: 1, kind: input, shape index: {}]   ;;  %s1984_s2 = inlined_call_operand.vmem [shape: bf16[4,128,128], index: 2, kind: input, shape index: {}]   ;;  %s1985_s3 = inlined_call_operand.vmem [shape: f32[4,1,128], index: 3, kind: input, shape index: {}]   ;;  %s1986_s4 = inlined_call_operand.vmem [shape: bf16[4,128,128], index: 4, kind: input, shape index: {}]   ;;  %s1987_s5 = inlined_call_operand.vmem [shape: f32[4,1,128], index: 5, kind: input, shape index: {}]   ;;  %s1988_s6 = inlined_call_operand.hbm [shape: f32[32,128], index: 6, kind: output, shape index: {}]  }
   0x1   :  { %v1592_v0 = vld [vmem:[%s1984_s2] sm:$0xff]   ;;  %v1593_v1 = vld [vmem:[%s1984_s2 + $0x8] sm:$0xff]   ;;  %v1594_v2 = vld [vmem:[%s1984_s2 + $0x10] sm:$0xff]  }
   0x2   :  { %1417 = vmatprep.subr.bf16.mxu0 %v1592_v0  ;;  %v1595_v3 = vld [vmem:[%s1984_s2 + $0x18] sm:$0xff]   ;;  %v1739_v4 = vld [vmem:[%s1982_s0] sm:$0xff]   ;;  %v1597_v6 = vld [vmem:[%s1984_s2 + $0x28] sm:$0xff]  }
   0x3   :  { %1418 = vmatpush3.bf16.msra.mxu0 %v1592_v0  ;;  %1433 = vmatprep.mubr.bf16.mxu0 %v1739_v4  ;;  %v1596_v5 = vld [vmem:[%s1984_s2 + $0x20] sm:$0xff]   ;;  %v1598_v7 = vld [vmem:[%s1984_s2 + $0x30] sm:$0xff]   ;;  %v1599_v8 = vld [vmem:[%s1984_s2 + $0x38] sm:$0xff]  }
   0x4   :  { %1419 = vmatprep.subr.bf16.mxu0 %v1593_v1  ;;  %v1602_v9 = vld [vmem:[%s1984_s2 + $0x40] sm:$0xff]   ;;  %v1760_v10 = vld [vmem:[%s1982_s0 + $0x8] sm:$0xff]   ;;  %v1604_v14 = vld [vmem:[%s1984_s2 + $0x50] sm:$0xff]  }
   0x5   :  { %v1603_v11 = vld [vmem:[%s1984_s2 + $0x48] sm:$0xff]   ;;  %v1626_v12 = vld [vmem:[%s1986_s4] sm:$0xff]   ;;  %v1628_v15 = vld [vmem:[%s1986_s4 + $0x10] sm:$0xff]  }
   0x6   :  { %v1627_v13 = vld [vmem:[%s1986_s4 + $0x8] sm:$0xff]   ;;  %1437 = vmatprep.subr.bf16.mxu1 %v1626_v12  ;;  %v1605_v16 = vld [vmem:[%s1984_s2 + $0x58] sm:$0xff]   ;;  %v1606_v18 = vld [vmem:[%s1984_s2 + $0x60] sm:$0xff]  }
   0x7   :  { %1420 = vmatpush3.bf16.msra.mxu0 %v1593_v1  ;;  %1438 = vmatpush3.bf16.msra.mxu1 %v1626_v12  ;;  %v1629_v17 = vld [vmem:[%s1986_s4 + $0x18] sm:$0xff]   ;;  %v1630_v19 = vld [vmem:[%s1986_s4 + $0x20] sm:$0xff]   ;;  %v1607_v20 = vld [vmem:[%s1984_s2 + $0x68] sm:$0xff]  }
   0x8   :  { %1421 = vmatprep.subr.bf16.mxu0 %v1594_v2  ;;  %1439 = vmatprep.subr.bf16.mxu1 %v1627_v13  ;;  %v1631_v21 = vld [vmem:[%s1986_s4 + $0x28] sm:$0xff]   ;;  %v1608_v22 = vld [vmem:[%s1984_s2 + $0x70] sm:$0xff]   ;;  %v1609_v23 = vld [vmem:[%s1984_s2 + $0x78] sm:$0xff]  }
   0xb   :  { %1422 = vmatpush3.bf16.msra.mxu0 %v1594_v2  ;;  %1440 = vmatpush3.bf16.msra.mxu1 %v1627_v13 }
   0xc   :  { %1423 = vmatprep.subr.bf16.mxu0 %v1595_v3  ;;  %1441 = vmatprep.subr.bf16.mxu1 %v1628_v15 }
   0xf   :  { %1424 = vmatpush3.bf16.msra.mxu0 %v1595_v3  ;;  %1442 = vmatpush3.bf16.msra.mxu1 %v1628_v15 }
  0x10   :  { %1425 = vmatprep.subr.bf16.mxu0 %v1596_v5  ;;  %1443 = vmatprep.subr.bf16.mxu1 %v1629_v17 }
  0x13   :  { %1426 = vmatpush3.bf16.msra.mxu0 %v1596_v5  ;;  %1444 = vmatpush3.bf16.msra.mxu1 %v1629_v17 }
  0x14   :  { %1427 = vmatprep.subr.bf16.mxu0 %v1597_v6  ;;  %1445 = vmatprep.subr.bf16.mxu1 %v1630_v19 }
  0x17   :  { %1428 = vmatpush3.bf16.msra.mxu0 %v1597_v6  ;;  %1446 = vmatpush3.bf16.msra.mxu1 %v1630_v19 }
  0x18   :  { %1429 = vmatprep.subr.bf16.mxu0 %v1598_v7  ;;  %1447 = vmatprep.subr.bf16.mxu1 %v1631_v21 }
  0x1b   :  { %1430 = vmatpush3.bf16.msra.mxu0 %v1598_v7  ;;  %1448 = vmatpush3.bf16.msra.mxu1 %v1631_v21 }
  0x1c   :  { %1431 = vmatprep.subr.bf16.mxu0 %v1599_v8 }
  0x1f   :  { %1432 = vmatpush3.bf16.msra.mxu0 %v1599_v8 }
  0x20   :  { %1457 = vmatprep.subr.bf16.mxu0 %v1602_v9 }
  0x22   :  { %1434 = vmatmul.mubr.bf16.vlgmr.msra.gmra.mrb[0].mxu0 %v1760_v10 }
  0x23   :  { %1458 = vmatpush3.bf16.msra.mxu0 %v1602_v9  ;;  %1473 = vmatprep.mubr.bf16.mxu0 %v1739_v4 }
  0x24   :  { %1459 = vmatprep.subr.bf16.mxu0 %v1603_v11 }
  0x27   :  { %1460 = vmatpush3.bf16.msra.mxu0 %v1603_v11 }
  0x28   :  { %1461 = vmatprep.subr.bf16.mxu0 %v1604_v14 }
  0x2b   :  { %1462 = vmatpush3.bf16.msra.mxu0 %v1604_v14 }
  0x2c   :  { %1463 = vmatprep.subr.bf16.mxu0 %v1605_v16 }
  0x2f   :  { %1464 = vmatpush3.bf16.msra.mxu0 %v1605_v16 }
  0x30   :  { %1465 = vmatprep.subr.bf16.mxu0 %v1606_v18 }
  0x33   :  { %1466 = vmatpush3.bf16.msra.mxu0 %v1606_v18 }
  0x34   :  { %1467 = vmatprep.subr.bf16.mxu0 %v1607_v20 }
  0x37   :  { %1468 = vmatpush3.bf16.msra.mxu0 %v1607_v20 }
  0x38   :  { %1469 = vmatprep.subr.bf16.mxu0 %v1608_v22 }
  0x39   :  { %11 = vsyncpa [#allocation3], 0  ;;  %v1610_v24 = vld [vmem:[%s1984_s2 + $0x80] sm:$0xff]   ;;  %v1611_v25 = vld [vmem:[%s1984_s2 + $0x88] sm:$0xff]   ;;  %v1682_v44 = vmov 0   ;;  %v1683_v48 = vmov 1  }
  0x3a   :  { %v1612_v26 = vld [vmem:[%s1984_s2 + $0x90] sm:$0xff]   ;;  %v1613_v27 = vld [vmem:[%s1984_s2 + $0x98] sm:$0xff]   ;;  %v1614_v28 = vld [vmem:[%s1984_s2 + $0xa0] sm:$0xff]   ;;  %1585 = vset.pattern.permute.xlu1 %v1682_v44  ;;  %1584 = vset.pattern.permute.xlu0 %v1682_v44  ;;  %v1684_v49 = vmov 2   ;;  %v1685_v50 = vmov 3   ;;  %s1686_s20 = smov [#allocation2]  }
  0x3b   :  { %1470 = vmatpush3.bf16.msra.mxu0 %v1608_v22  ;;  %v1615_v29 = vld [vmem:[%s1984_s2 + $0xa8] sm:$0xff]   ;;  %v1616_v30 = vld [vmem:[%s1984_s2 + $0xb0] sm:$0xff]   ;;  %v1617_v31 = vld [vmem:[%s1984_s2 + $0xb8] sm:$0xff]   ;;  %s1150_s21 = sshll.u32 %s1686_s20, 4  ;;  %s1151_s21 = int_to_ptr.vmem [resolvable:$true] %s1150_s21 }
  0x3c   :  { %1471 = vmatprep.subr.bf16.mxu0 %v1609_v23  ;;  %v1618_v32 = vld [vmem:[%s1984_s2 + $0xc0] sm:$0xff]   ;;  %v1619_v33 = vld [vmem:[%s1984_s2 + $0xc8] sm:$0xff]   ;;  %v1620_v34 = vld [vmem:[%s1984_s2 + $0xd0] sm:$0xff]   ;;  %p1663_p1 = scmp.lt.s32.totalorder %s1151_s21, %s1151_s21 }
  0x3d   :  { %v1621_v35 = vld [vmem:[%s1984_s2 + $0xd8] sm:$0xff]   ;;  %v1622_v36 = vld [vmem:[%s1984_s2 + $0xe0] sm:$0xff]   ;;  %v1623_v37 = vld [vmem:[%s1984_s2 + $0xe8] sm:$0xff]  }
  0x3e   :  { %v1624_v38 = vld [vmem:[%s1984_s2 + $0xf0] sm:$0xff]   ;;  %v1625_v40 = vld [vmem:[%s1984_s2 + $0xf8] sm:$0xff]   ;;  %v1634_v42 = vld [vmem:[%s1986_s4 + $0x40] sm:$0xff]  }
  0x3f   :  { %1472 = vmatpush3.bf16.msra.mxu0 %v1609_v23  ;;  %v1632_v39 = vld [vmem:[%s1986_s4 + $0x30] sm:$0xff]   ;;  %v1633_v41 = vld [vmem:[%s1986_s4 + $0x38] sm:$0xff]   ;;  %v29_v45 = vld [vmem:[%s1983_s1] sm:$0xff] }
  0x40   :  { %1497 = vmatprep.subr.bf16.mxu0 %v1610_v24  ;;  %1449 = vmatprep.subr.bf16.mxu1 %v1632_v39  ;;  %v31_v43 = vld [vmem:[%s1983_s1 + $0x10] sm:$0xff]  ;;  %v32_v46 = vld [vmem:[%s1983_s1 + $0x18] sm:$0xff]  ;;  %v30_v47 = vld [vmem:[%s1983_s1 + $0x8] sm:$0xff] }
  0x41   :  { %1450 = vmatpush3.bf16.msra.mxu1 %v1632_v39  ;;  %303 = vperm.xlu1 %1585, %v31_v43   ;;  %v1161_v51 = vld [vmem:[%s1985_s3] ss:$0 sm:$0xff]  ;;  %v1635_v2 = vld [vmem:[%s1986_s4 + $0x48] sm:$0xff]   ;;  %v1636_v3 = vld [vmem:[%s1986_s4 + $0x50] sm:$0xff]  }
  0x42   :  { %1474 = vmatmul.mubr.bf16.vlgmr.msra.gmra.mrb[4].mxu0 %v1760_v10  ;;  %1451 = vmatprep.subr.bf16.mxu1 %v1633_v41  ;;  %v1638_v5 = vld [vmem:[%s1986_s4 + $0x60] sm:$0xff]   ;;  %v1639_v6 = vld [vmem:[%s1986_s4 + $0x68] sm:$0xff]   ;;  %v1640_v7 = vld [vmem:[%s1986_s4 + $0x70] sm:$0xff]  }
  0x43   :  { %1498 = vmatpush3.bf16.msra.mxu0 %v1610_v24  ;;  %1513 = vmatprep.mubr.bf16.mxu0 %v1739_v4  ;;  %v1198_v8 = vld [vmem:[%s1985_s3 + $0x1] ss:$0 sm:$0xff]  ;;  %v1641_v12 = vld [vmem:[%s1986_s4 + $0x78] sm:$0xff]  }
  0x44   :  { %1499 = vmatprep.subr.bf16.mxu0 %v1611_v25  ;;  %293 = vperm.xlu0 %1584, %v29_v45   ;;  %v1642_v20 = vld [vmem:[%s1986_s4 + $0x80] sm:$0xff]  }
  0x45   :  { %1452 = vmatpush3.bf16.msra.mxu1 %v1633_v41  ;;  %308 = vperm.xlu1 %1585, %v32_v46  }
  0x46   :  { %1477 = vmatprep.subr.bf16.mxu1 %v1634_v42 }
  0x47   :  { %1500 = vmatpush3.bf16.msra.mxu0 %v1611_v25  ;;  %v1643_v25 = vld [vmem:[%s1986_s4 + $0x88] sm:$0xff]  }
  0x48   :  { %1501 = vmatprep.subr.bf16.mxu0 %v1612_v26  ;;  %298 = vperm.xlu0 %1584, %v30_v47  }
  0x49   :  { %1587 = vset.pattern.permute.xlu1 %v1683_v48 }
  0x4a   :  { %574 = vperm.xlu1 %1587, %v30_v47  }
  0x4b   :  { %1502 = vmatpush3.bf16.msra.mxu0 %v1612_v26  ;;  %v1644_v26 = vld [vmem:[%s1986_s4 + $0x90] sm:$0xff]  }
  0x4c   :  { %1503 = vmatprep.subr.bf16.mxu0 %v1613_v27  ;;  %1586 = vset.pattern.permute.xlu0 %v1683_v48  ;;  %v1651_v48 = vld [vmem:[%s1986_s4 + $0xc8] sm:$0xff]  }
  0x4d   :  { %570 = vperm.xlu0 %1586, %v29_v45  }
  0x4e   :  { %578 = vperm.xlu1 %1587, %v31_v43  }
  0x4f   :  { %1504 = vmatpush3.bf16.msra.mxu0 %v1613_v27  ;;  %v1645_v27 = vld [vmem:[%s1986_s4 + $0x98] sm:$0xff]  }
  0x50   :  { %1505 = vmatprep.subr.bf16.mxu0 %v1614_v28 }
  0x51   :  { %582 = vperm.xlu0 %1586, %v32_v46  }
  0x52   :  { %1588 = vset.pattern.permute.xlu1 %v1684_v49 }
  0x53   :  { %1506 = vmatpush3.bf16.msra.mxu0 %v1614_v28  ;;  %844 = vperm.xlu1 %1588, %v29_v45   ;;  %v1646_v28 = vld [vmem:[%s1986_s4 + $0xa0] sm:$0xff]  }
  0x54   :  { %1507 = vmatprep.subr.bf16.mxu0 %v1615_v29 }
  0x55   :  { %1589 = vset.pattern.permute.xlu0 %v1684_v49  ;;  %v1652_v49 = vld [vmem:[%s1986_s4 + $0xd0] sm:$0xff]  }
  0x56   :  { %848 = vperm.xlu0 %1589, %v30_v47  }
  0x57   :  { %1508 = vmatpush3.bf16.msra.mxu0 %v1615_v29  ;;  %852 = vperm.xlu1 %1588, %v31_v43   ;;  %v1647_v29 = vld [vmem:[%s1986_s4 + $0xa8] sm:$0xff]  }
  0x58   :  { %1509 = vmatprep.subr.bf16.mxu0 %v1616_v30 }
  0x5a   :  { %1590 = vset.pattern.permute.xlu0 %v1685_v50 }
  0x5b   :  { %1510 = vmatpush3.bf16.msra.mxu0 %v1616_v30  ;;  %1118 = vperm.xlu0 %1590, %v29_v45   ;;  %v1648_v30 = vld [vmem:[%s1986_s4 + $0xb0] sm:$0xff]  }
  0x5c   :  { %1511 = vmatprep.subr.bf16.mxu0 %v1617_v31  ;;  %856 = vperm.xlu1 %1588, %v32_v46  }
  0x5f   :  { %1512 = vmatpush3.bf16.msra.mxu0 %v1617_v31  ;;  %1130 = vperm.xlu0 %1590, %v32_v46   ;;  %v1250_v31 = vld [vmem:[%s1985_s3 + $0x2] ss:$0 sm:$0xff] }
  0x60   :  { %1537 = vmatprep.subr.bf16.mxu0 %v1618_v32  ;;  %1591 = vset.pattern.permute.xlu1 %v1685_v50  ;;  %v1653_v50 = vld [vmem:[%s1986_s4 + $0xd8] sm:$0xff]  }
  0x61   :  { %1122 = vperm.xlu1 %1591, %v30_v47  }
  0x62   :  { %1514 = vmatmul.mubr.bf16.vlgmr.msra.gmra.mrb[8].mxu0 %v1760_v10 }
  0x63   :  { %1538 = vmatpush3.bf16.msra.mxu0 %v1618_v32  ;;  %1553 = vmatprep.mubr.bf16.mxu0 %v1739_v4  ;;  %v1637_v4 = vld [vmem:[%s1986_s4 + $0x58] sm:$0xff]  }
  0x64   :  { %1539 = vmatprep.subr.bf16.mxu0 %v1619_v33 }
  0x65   :  { %1126 = vperm.xlu1 %1591, %v31_v43   ;;  %v1650_v43 = vld [vmem:[%s1986_s4 + $0xc0] sm:$0xff]  }
  0x67   :  { %1540 = vmatpush3.bf16.msra.mxu0 %v1619_v33 }
  0x68   :  { %1541 = vmatprep.subr.bf16.mxu0 %v1620_v34 }
  0x6b   :  { %1542 = vmatpush3.bf16.msra.mxu0 %v1620_v34 }
  0x6c   :  { %1543 = vmatprep.subr.bf16.mxu0 %v1621_v35 }
  0x6f   :  { %1544 = vmatpush3.bf16.msra.mxu0 %v1621_v35  ;;  %v1649_v35 = vld [vmem:[%s1986_s4 + $0xb8] sm:$0xff]  }
  0x70   :  { %1545 = vmatprep.subr.bf16.mxu0 %v1622_v36 }
  0x73   :  { %1546 = vmatpush3.bf16.msra.mxu0 %v1622_v36 }
  0x74   :  { %1547 = vmatprep.subr.bf16.mxu0 %v1623_v37 }
  0x77   :  { %1548 = vmatpush3.bf16.msra.mxu0 %v1623_v37 }
  0x78   :  { %1549 = vmatprep.subr.bf16.mxu0 %v1624_v38 }
  0x7b   :  { %1550 = vmatpush3.bf16.msra.mxu0 %v1624_v38 }
  0x7c   :  { %1551 = vmatprep.subr.bf16.mxu0 %v1625_v40 }
  0x7f   :  { %1552 = vmatpush3.bf16.msra.mxu0 %v1625_v40 }
  0x82   :  { %1554 = vmatmul.mubr.bf16.vlgmr.msra.gmra.mrb[12].mxu0 %v1760_v10 }
  0xf5   :  { %v1435_v52 = vpop.f32.mrb[0].mxu0 }
  0xf6   :  { %v159_v53 = vadd.f32 %v1435_v52, %v1161_v51  ;;  %v150_v54 = vpop.f32.mrb[1].mxu0  ;;  %v1655_v52 = vld [vmem:[%s1986_s4 + $0xe8] sm:$0xff]  }
  0xf7   :  { %v151_v55 = vadd.f32 %v1161_v51, %v150_v54  ;;  %v1436_v56 = vpop.f32.mrb[2].mxu0  ;;  %v1302_v54 = vld [vmem:[%s1985_s3 + $0x3] ss:$0 sm:$0xff] }
  0xf8   :  { %v167_v57 = vmax.f32 %v159_v53, 0.0  ;;  %v162_v58 = vadd.f32 %v1436_v56, %v1161_v51  ;;  %v153_v59 = vpop.f32.mrb[3].mxu0  ;;  %v1656_v53 = vld [vmem:[%s1986_s4 + $0xf0] sm:$0xff]  }
  0xf9   :  { %v154_v60 = vadd.f32 %v1161_v51, %v153_v59  ;;  %v165_v62 = vmax.f32 %v151_v55, 0.0  ;;  %v1654_v51 = vld [vmem:[%s1986_s4 + $0xe0] sm:$0xff]  }
  0xfa   :  { %v168_v61 = vmax.f32 %v162_v58, 0.0  ;;  %v1657_v58 = vld [vmem:[%s1986_s4 + $0xf8] sm:$0xff]  }
  0xfb   :  { %v166_v63 = vmax.f32 %v154_v60, 0.0 }
  0xfc   :  { %v170_v0 = vpack.c.bf16 %v168_v61, %v167_v57 }
  0xfd   :  { %v169_v1 = vpack.c.bf16 %v166_v63, %v165_v62 }
  0xff   :  { %1453 = vmatprep.mubr.bf16.mxu1 %v169_v1 }
 0x100   :  { %1454 = vmatmul.mubr.bf16.vlgmr.msra.gmra.mrb[0].mxu1 %v170_v0 }
 0x101   :  { %1478 = vmatpush3.bf16.msra.mxu1 %v1634_v42 }
 0x102   :  { %1479 = vmatprep.subr.bf16.mxu1 %v1635_v2 }
 0x105   :  { %1480 = vmatpush3.bf16.msra.mxu1 %v1635_v2 }
 0x106   :  { %1481 = vmatprep.subr.bf16.mxu1 %v1636_v3 }
 0x109   :  { %1482 = vmatpush3.bf16.msra.mxu1 %v1636_v3 }
 0x10a   :  { %1483 = vmatprep.subr.bf16.mxu1 %v1637_v4 }
 0x10d   :  { %1484 = vmatpush3.bf16.msra.mxu1 %v1637_v4 }
 0x10e   :  { %1485 = vmatprep.subr.bf16.mxu1 %v1638_v5 }
 0x111   :  { %1486 = vmatpush3.bf16.msra.mxu1 %v1638_v5 }
 0x112   :  { %1487 = vmatprep.subr.bf16.mxu1 %v1639_v6 }
 0x115   :  { %v1475_v9 = vpop.f32.mrb[4].mxu0  ;;  %1488 = vmatpush3.bf16.msra.mxu1 %v1639_v6 }
 0x116   :  { %v435_v10 = vadd.f32 %v1475_v9, %v1198_v8  ;;  %v426_v11 = vpop.f32.mrb[5].mxu0  ;;  %1489 = vmatprep.subr.bf16.mxu1 %v1640_v7 }
 0x117   :  { %v427_v13 = vadd.f32 %v1198_v8, %v426_v11  ;;  %v1476_v14 = vpop.f32.mrb[6].mxu0  ;;  %v294_v11 = vpop.permute.xlu0 %293 }
 0x118   :  { %v443_v15 = vmax.f32 %v435_v10, 0.0  ;;  %v438_v16 = vadd.f32 %v1476_v14, %v1198_v8  ;;  %v429_v17 = vpop.f32.mrb[7].mxu0  ;;  %v304_v10 = vpop.permute.xlu1 %303 }
 0x119   :  { %v430_v18 = vadd.f32 %v1198_v8, %v429_v17  ;;  %1490 = vmatpush3.bf16.msra.mxu1 %v1640_v7  ;;  %v441_v21 = vmax.f32 %v427_v13, 0.0  ;;  %v1224_v17 = vld [vmem:[%s1987_s5 + $0x1] ss:$0 sm:$0xff] }
 0x11a   :  { %v444_v19 = vmax.f32 %v438_v16, 0.0  ;;  %1491 = vmatprep.subr.bf16.mxu1 %v1641_v12 }
 0x11b   :  { %v442_v22 = vmax.f32 %v430_v18, 0.0  ;;  %v299_v13 = vpop.permute.xlu0 %298 }
 0x11c   :  { %v446_v23 = vpack.c.bf16 %v444_v19, %v443_v15  ;;  %v1172_v15 = vld [vmem:[%s1987_s5] ss:$0 sm:$0xff] }
 0x11d   :  { %v445_v24 = vpack.c.bf16 %v442_v22, %v441_v21  ;;  %1492 = vmatpush3.bf16.msra.mxu1 %v1641_v12  ;;  %v309_v12 = vpop.permute.xlu1 %308 }
 0x11e   :  { %1517 = vmatprep.subr.bf16.mxu1 %v1642_v20 }
 0x11f   :  { %1493 = vmatprep.mubr.bf16.mxu1 %v445_v24  ;;  %v571_v16 = vpop.permute.xlu0 %570 }
 0x120   :  { %1494 = vmatmul.mubr.bf16.vlgmr.msra.gmra.mrb[4].mxu1 %v446_v23 }
 0x121   :  { %1518 = vmatpush3.bf16.msra.mxu1 %v1642_v20  ;;  %v575_v14 = vpop.permute.xlu1 %574 }
 0x122   :  { %1519 = vmatprep.subr.bf16.mxu1 %v1643_v25 }
 0x125   :  { %1520 = vmatpush3.bf16.msra.mxu1 %v1643_v25  ;;  %v579_v21 = vpop.permute.xlu1 %578 }
 0x126   :  { %1521 = vmatprep.subr.bf16.mxu1 %v1644_v26 }
 0x129   :  { %1522 = vmatpush3.bf16.msra.mxu1 %v1644_v26 }
 0x12a   :  { %1523 = vmatprep.subr.bf16.mxu1 %v1645_v27 }
 0x12d   :  { %1524 = vmatpush3.bf16.msra.mxu1 %v1645_v27 }
 0x12e   :  { %1525 = vmatprep.subr.bf16.mxu1 %v1646_v28 }
 0x131   :  { %1526 = vmatpush3.bf16.msra.mxu1 %v1646_v28  ;;  %v583_v28 = vpop.permute.xlu0 %582 }
 0x132   :  { %1527 = vmatprep.subr.bf16.mxu1 %v1647_v29 }
 0x135   :  { %v1515_v32 = vpop.f32.mrb[8].mxu0  ;;  %1528 = vmatpush3.bf16.msra.mxu1 %v1647_v29 }
 0x136   :  { %v709_v33 = vadd.f32 %v1515_v32, %v1250_v31  ;;  %v700_v34 = vpop.f32.mrb[9].mxu0  ;;  %1529 = vmatprep.subr.bf16.mxu1 %v1648_v30 }
 0x137   :  { %v701_v36 = vadd.f32 %v1250_v31, %v700_v34  ;;  %v1516_v37 = vpop.f32.mrb[10].mxu0 }
 0x138   :  { %v717_v38 = vmax.f32 %v709_v33, 0.0  ;;  %v712_v39 = vadd.f32 %v1516_v37, %v1250_v31  ;;  %v703_v40 = vpop.f32.mrb[11].mxu0 }
 0x139   :  { %v704_v41 = vadd.f32 %v1250_v31, %v703_v40  ;;  %1530 = vmatpush3.bf16.msra.mxu1 %v1648_v30  ;;  %v715_v44 = vmax.f32 %v701_v36, 0.0 }
 0x13a   :  { %v718_v42 = vmax.f32 %v712_v39, 0.0  ;;  %1531 = vmatprep.subr.bf16.mxu1 %v1649_v35 }
 0x13b   :  { %v716_v45 = vmax.f32 %v704_v41, 0.0 }
 0x13c   :  { %v720_v46 = vpack.c.bf16 %v718_v42, %v717_v38 }
 0x13d   :  { %v719_v47 = vpack.c.bf16 %v716_v45, %v715_v44  ;;  %1532 = vmatpush3.bf16.msra.mxu1 %v1649_v35  ;;  %v845_v44 = vpop.permute.xlu1 %844 }
 0x13e   :  { %1557 = vmatprep.subr.bf16.mxu1 %v1650_v43 }
 0x13f   :  { %1533 = vmatprep.mubr.bf16.mxu1 %v719_v47 }
 0x140   :  { %1534 = vmatmul.mubr.bf16.vlgmr.msra.gmra.mrb[8].mxu1 %v720_v46  ;;  %v1276_v46 = vld [vmem:[%s1987_s5 + $0x2] ss:$0 sm:$0xff] }
 0x141   :  { %1558 = vmatpush3.bf16.msra.mxu1 %v1650_v43  ;;  %v853_v45 = vpop.permute.xlu1 %852 }
 0x142   :  { %1559 = vmatprep.subr.bf16.mxu1 %v1651_v48 }
 0x145   :  { %1560 = vmatpush3.bf16.msra.mxu1 %v1651_v48 }
 0x146   :  { %1561 = vmatprep.subr.bf16.mxu1 %v1652_v49 }
 0x149   :  { %1562 = vmatpush3.bf16.msra.mxu1 %v1652_v49 }
 0x14a   :  { %1563 = vmatprep.subr.bf16.mxu1 %v1653_v50 }
 0x14d   :  { %1564 = vmatpush3.bf16.msra.mxu1 %v1653_v50 }
 0x14e   :  { %1565 = vmatprep.subr.bf16.mxu1 %v1654_v51 }
 0x151   :  { %1566 = vmatpush3.bf16.msra.mxu1 %v1654_v51 }
 0x152   :  { %1567 = vmatprep.subr.bf16.mxu1 %v1655_v52 }
 0x155   :  { %v1555_v55 = vpop.f32.mrb[12].mxu0  ;;  %1568 = vmatpush3.bf16.msra.mxu1 %v1655_v52  ;;  %v857_v52 = vpop.permute.xlu1 %856 }
 0x156   :  { %v983_v56 = vadd.f32 %v1555_v55, %v1302_v54  ;;  %v974_v57 = vpop.f32.mrb[13].mxu0  ;;  %1569 = vmatprep.subr.bf16.mxu1 %v1656_v53 }
 0x157   :  { %v975_v59 = vadd.f32 %v1302_v54, %v974_v57  ;;  %v1556_v60 = vpop.f32.mrb[14].mxu0 }
 0x158   :  { %v986_v61 = vadd.f32 %v1556_v60, %v1302_v54  ;;  %v977_v62 = vpop.f32.mrb[15].mxu0  ;;  %v991_v0 = vmax.f32 %v983_v56, 0.0  ;;  %v849_v56 = vpop.permute.xlu0 %848 }
 0x159   :  { %v978_v63 = vadd.f32 %v1302_v54, %v977_v62  ;;  %1570 = vmatpush3.bf16.msra.mxu1 %v1656_v53  ;;  %v989_v2 = vmax.f32 %v975_v59, 0.0 }
 0x15a   :  { %v992_v1 = vmax.f32 %v986_v61, 0.0  ;;  %1571 = vmatprep.subr.bf16.mxu1 %v1657_v58 }
 0x15b   :  { %v990_v3 = vmax.f32 %v978_v63, 0.0 }
 0x15c   :  { %v994_v4 = vpack.c.bf16 %v992_v1, %v991_v0  ;;  %v1123_v1 = vpop.permute.xlu1 %1122 }
 0x15d   :  { %v993_v5 = vpack.c.bf16 %v990_v3, %v989_v2  ;;  %1572 = vmatpush3.bf16.msra.mxu1 %v1657_v58  ;;  %v1119_v2 = vpop.permute.xlu0 %1118  ;;  %v1328_v3 = vld [vmem:[%s1987_s5 + $0x3] ss:$0 sm:$0xff]  ;;  %s1658_s5 = scalar_lea.vmem %s1151_s21, 512 }
 0x15e   :  { %p1659_p0 = scmp.ne.s32.totalorder %s1151_s21, %s1658_s5  ;;  %p1664_p2 = scmp.lt.s32.totalorder %s1658_s5, %s1658_s5 }
 0x15f   :  { %1573 = vmatprep.mubr.bf16.mxu1 %v993_v5 }
 0x160   :  { %1574 = vmatmul.mubr.bf16.vlgmr.msra.gmra.mrb[12].mxu1 %v994_v4  ;;  %v1127_v5 = vpop.permute.xlu1 %1126  ;;  %p1665_p3 = por %p1664_p2, %p1663_p1 }
 0x162   :  { %p1666_p4 = pnand %p1665_p3, %p1659_p0 }
 0x1d3   :  { %v1455_v6 = vpop.f32.mrb[0].mxu1 }
 0x1d4   :  { %v276_v7 = vpop.f32.mrb[1].mxu1  ;;  %v285_v18 = vadd.f32 %v1455_v6, %v1172_v15 }
 0x1d5   :  { %v1456_v8 = vpop.f32.mrb[2].mxu1  ;;  %v277_v19 = vadd.f32 %v1172_v15, %v276_v7 }
 0x1d6   :  { %v279_v9 = vpop.f32.mrb[3].mxu1  ;;  %v288_v22 = vadd.f32 %v1456_v8, %v1172_v15  ;;  %v313_v29 = vmul.f32 %v304_v10, %v285_v18 }
 0x1d7   :  { %v280_v25 = vadd.f32 %v1172_v15, %v279_v9  ;;  %v311_v33 = vmul.f32 %v294_v11, %v277_v19 }
 0x1d8   :  { %v314_v36 = vmul.f32 %v309_v12, %v288_v22 }
 0x1d9   :  { %v312_v39 = vmul.f32 %v299_v13, %v280_v25  ;;  %v1131_v13 = vpop.permute.xlu0 %1130 }
 0x1f3   :  { %v1495_v20 = vpop.f32.mrb[4].mxu1 }
 0x1f4   :  { %v563_v23 = vadd.f32 %v1495_v20, %v1224_v17  ;;  %v554_v24 = vpop.f32.mrb[5].mxu1 }
 0x1f5   :  { %v555_v26 = vadd.f32 %v1224_v17, %v554_v24  ;;  %v1496_v27 = vpop.f32.mrb[6].mxu1 }
 0x1f6   :  { %v587_v30 = vmul.f32 %v579_v21, %v563_v23  ;;  %v566_v31 = vadd.f32 %v1496_v27, %v1224_v17  ;;  %v557_v32 = vpop.f32.mrb[7].mxu1 }
 0x1f7   :  { %v585_v34 = vmul.f32 %v571_v16, %v555_v26  ;;  %v558_v35 = vadd.f32 %v1224_v17, %v557_v32 }
 0x1f8   :  { %v591_v37 = vadd.f32 %v587_v30, %v313_v29  ;;  %v588_v38 = vmul.f32 %v583_v28, %v566_v31 }
 0x1f9   :  { %v589_v40 = vadd.f32 %v585_v34, %v311_v33  ;;  %v586_v41 = vmul.f32 %v575_v14, %v558_v35 }
 0x1fa   :  { %v592_v42 = vadd.f32 %v588_v38, %v314_v36 }
 0x1fb   :  { %v590_v43 = vadd.f32 %v586_v41, %v312_v39 }
 0x213   :  { %v1535_v47 = vpop.f32.mrb[8].mxu1 }
 0x214   :  { %v837_v48 = vadd.f32 %v1535_v47, %v1276_v46  ;;  %v828_v49 = vpop.f32.mrb[9].mxu1 }
 0x215   :  { %v829_v50 = vadd.f32 %v1276_v46, %v828_v49  ;;  %v1536_v51 = vpop.f32.mrb[10].mxu1 }
 0x216   :  { %v861_v53 = vmul.f32 %v853_v45, %v837_v48  ;;  %v840_v54 = vadd.f32 %v1536_v51, %v1276_v46  ;;  %v831_v55 = vpop.f32.mrb[11].mxu1 }
 0x217   :  { %v859_v57 = vmul.f32 %v845_v44, %v829_v50  ;;  %v832_v58 = vadd.f32 %v1276_v46, %v831_v55 }
 0x218   :  { %v862_v59 = vmul.f32 %v857_v52, %v840_v54  ;;  %v865_v60 = vadd.f32 %v861_v53, %v591_v37 }
 0x219   :  { %v863_v61 = vadd.f32 %v859_v57, %v589_v40  ;;  %v860_v62 = vmul.f32 %v849_v56, %v832_v58 }
 0x21a   :  { %v866_v63 = vadd.f32 %v862_v59, %v592_v42 }
 0x21b   :  { %v864_v0 = vadd.f32 %v860_v62, %v590_v43 }
 0x233   :  { %v1575_v4 = vpop.f32.mrb[12].mxu1 }
 0x234   :  { %v1111_v6 = vadd.f32 %v1575_v4, %v1328_v3  ;;  %v1102_v7 = vpop.f32.mrb[13].mxu1 }
 0x235   :  { %v1103_v8 = vadd.f32 %v1328_v3, %v1102_v7  ;;  %v1576_v9 = vpop.f32.mrb[14].mxu1 }
 0x236   :  { %v1135_v10 = vmul.f32 %v1127_v5, %v1111_v6  ;;  %v1114_v11 = vadd.f32 %v1576_v9, %v1328_v3  ;;  %v1105_v12 = vpop.f32.mrb[15].mxu1 }
 0x237   :  { %v1133_v14 = vmul.f32 %v1119_v2, %v1103_v8  ;;  %v1106_v15 = vadd.f32 %v1328_v3, %v1105_v12 }
 0x238   :  { %v1139_v16 = vadd.f32 %v1135_v10, %v865_v60  ;;  %v1136_v17 = vmul.f32 %v1131_v13, %v1114_v11 }
 0x239   :  { %v1137_v18 = vadd.f32 %v1133_v14, %v863_v61  ;;  %v1134_v19 = vmul.f32 %v1123_v1, %v1106_v15 }
 0x23a   :  { %1143 = vst [vmem:[#allocation2 + $0x10] sm:$0xff] %v1139_v16  ;;  %v1140_v20 = vadd.f32 %v1136_v17, %v866_v63 }
 0x23b   :  { %1141 = vst [vmem:[#allocation2] sm:$0xff] %v1137_v18  ;;  %v1138_v21 = vadd.f32 %v1134_v19, %v864_v0 }
 0x23c   :  { %1144 = vst [vmem:[#allocation2 + $0x18] sm:$0xff] %v1140_v20 }
 0x23d   :  { %1142 = vst [vmem:[#allocation2 + $0x8] sm:$0xff] %v1138_v21 }
 0x23e   :  { %1669 = shalt.err (!%p1666_p4)
}
 0x23f   :  { %s1670_s24 = scalar_lea.hbm %s1988_s6, 512 }
 0x240   :  { %p1671_p5 = scmp.ne.s32.totalorder %s1988_s6, %s1670_s24  ;;  %p1674_p6 = scmp.lt.u32.totalorder %s1670_s24, %s1988_s6 }
 0x242   :  { %p1676_p7 = pnand %p1674_p6, %p1671_p5 }
 0x244   :  { %1679 = shalt.err (!%p1676_p7)
}
 0x245   :  { %s1687_s28 = smov 128   ;;  %s1688_s29 = smov 8  }
 0x246   :  { %1156 = dma.vmem_to_hbm [thread:$0]  %s1151_s21, 512, %s1988_s6, [#allocation3], %s1687_s28, %s1687_s28, %s1688_s29  }
 0x247   :  { %1680 = dma.done.wait [#allocation3], 512  }
 0x248   :  { %1681 = vsyncadd [#allocation3], 4294966784 }
 0x249   :  { %1160 = vsyncpa [#allocation3], 1 }

</bundles_post_ra>
